<compile_context>
chip_gen: v6e
topology: v6e:2x2x1
jax: 0.10.0
libtpu: 0.0.40
codegen_flags: <defaults>
</compile_context>

<pallas_src>
import jax
import jax.numpy as jnp
import numpy as np
from jax.experimental import pallas as pl
from jax.experimental.pallas import tpu as pltpu


def _inject_kernel(x_ref, q_ref, v_ref, o_ref):
    # x_ref/o_ref: (TM, d)   q_ref: (TM, wn)   v_ref: (wn, d)
    p = jnp.dot(q_ref[...], v_ref[...], preferred_element_type=jnp.float32)
    o_ref[...] = (x_ref[...].astype(jnp.float32) + p).astype(o_ref.dtype)


def _choose_tile_m(m, d, *, max_tm=1024, vmem_budget_bytes=24 * 1024 * 1024):
    """Row-tile size: multiple of 8 (or the full dim), capped by max_tm and by a
    VMEM budget (x-in + out, double-buffered => 4 tiles of TM*d*4 bytes), and
    giving at least 2 tiles when possible so both v7x TensorCores get work."""
    if m <= 16:
        return m                          # full dim (legal even if not 8-aligned)
    # VMEM cap: 4 * (tm * d * 4 bytes) <= budget
    tm_vmem = max(8, (vmem_budget_bytes // (4 * d * 4)) // 8 * 8)
    half = -(-m // 2)                     # ceil(m / 2) -> at least 2 grid steps
    tm = -(-half // 8) * 8                # round up to multiple of 8
    return max(8, min(tm, max_tm, tm_vmem))


def adversarial_inject(X, Qs, V, *, max_tm=1024):
    """X += einsum('biuw,id->buwd', Qs, V), computed in a Pallas kernel.

    X : (bs, utt_num, max_words, embed_dim) float32
    Qs: (bs, word_num, utt_num, max_words)  float32
    V : (word_num, embed_dim)               float32  (stacked self.vects)
    """
    bs, utt, mw, d = X.shape
    wn = V.shape[0]
    assert Qs.shape == (bs, wn, utt, mw)
    assert V.shape == (wn, d)

    m = bs * utt * mw
    x_flat = X.reshape(m, d)
    # Fold the (word_num -> minor) transpose and the flatten of the small Qs
    # tensor into a single cheap pass (Qs is ~d/wn times smaller than X).
    q_flat = jnp.transpose(Qs, (0, 2, 3, 1)).reshape(m, wn)

    tm = _choose_tile_m(m, d, max_tm=max_tm)
    grid_m = pl.cdiv(m, tm)   # partial last block handled by Pallas (masked write)

    out = pl.pallas_call(
        _inject_kernel,
        out_shape=jax.ShapeDtypeStruct((m, d), X.dtype),
        grid=(grid_m,),
        in_specs=[
            pl.BlockSpec((tm, d), lambda i: (i, 0)),
            pl.BlockSpec((tm, wn), lambda i: (i, 0)),
            pl.BlockSpec((wn, d), lambda i: (0, 0)),
        ],
        out_specs=pl.BlockSpec((tm, d), lambda i: (i, 0)),
        # X += ... : reuse X's HBM buffer for the output.
        input_output_aliases={0: 0},
        compiler_params=pltpu.CompilerParams(
            dimension_semantics=("parallel",),
            # Above v5e's 16 MiB default scoped limit, safe within v7x's VMEM.
            vmem_limit_bytes=32 * 1024 * 1024,
        ),
    )(x_flat, q_flat, V)

    return out.reshape(bs, utt, mw, d)


def attack_part3_forward(X, M, L, Qs, V):
    """Forward pass of attack_part3 (adversarial word injection part).

    M, L are accepted for signature fidelity; they are consumed only by the
    torch-loaded downstream model, which is not reproduced here.
    """
    X_adv = adversarial_inject(X, Qs, V)
    # TODO(synk): y_pred = self.model(X_adv, M, L) -- checkpoint-loaded RNN
    # multihead model; architecture/weights unavailable, no Pallas equivalent.
    return X_adv


def _make_inputs(key, bs, word_num, utt_num, max_words, embed_dim):
    kx, kv, kl = jax.random.split(key, 3)
    X = jax.random.normal(kx, (bs, utt_num, max_words, embed_dim), jnp.float32)
    # Qs: zeros with a single 1 at position L+i for each (batch, word i, utterance)
    L = jax.random.randint(kl, (bs, utt_num), 0, max_words - word_num)
    pos = L[:, None, :] + jnp.arange(word_num)[None, :, None]          # (bs, wn, utt)
    Qs = (jnp.arange(max_words)[None, None, None, :] == pos[..., None]).astype(jnp.float32)
    # Deterministically-initialized adversarial word vectors (stacked self.vects)
    V = jax.random.normal(kv, (word_num, embed_dim), jnp.float32)
    # M (mask) -- unused here, consumed only by the downstream torch model
    M = jnp.ones((bs, utt_num, max_words), jnp.float32)
    return X, M, L, Qs, V


if __name__ == "__main__":
    fwd = jax.jit(attack_part3_forward)

    # Case 1: small shapes consistent with the forward (tile-divisible rows).
    X, M, L, Qs, V = _make_inputs(jax.random.PRNGKey(0), 2, 4, 4, 8, 128)
    out = jax.block_until_ready(fwd(X, M, L, Qs, V))
    ref = X + jnp.einsum("biuw,id->buwd", Qs, V)
    assert out.shape == X.shape
    np.testing.assert_allclose(np.asarray(out), np.asarray(ref), rtol=1e-5, atol=1e-5)

    # Case 2: row count not divisible by the tile (exercises masked boundary block).
    X2, M2, L2, Qs2, V2 = _make_inputs(jax.random.PRNGKey(0), 2, 4, 4, 9, 128)
    out2 = jax.block_until_ready(fwd(X2, M2, L2, Qs2, V2))
    ref2 = X2 + jnp.einsum("biuw,id->buwd", Qs2, V2)
    np.testing.assert_allclose(np.asarray(out2), np.asarray(ref2), rtol=1e-5, atol=1e-5)

    print("KERNEL_OK")
</pallas_src>

<mosaic_0001>
module attributes {stable_mosaic.version = 11 : i64} {
  func.func @_inject_kernel(%arg0: i32, %arg1: memref<32x128xf32, #tpu.memory_space<vmem>>, %arg2: memref<32x4xf32, #tpu.memory_space<vmem>>, %arg3: memref<4x128xf32, #tpu.memory_space<vmem>>, %arg4: memref<32x128xf32, #tpu.memory_space<vmem>>) attributes {dimension_semantics = [#tpu.dimension_semantics<parallel>], iteration_bounds = array<i64: 2>, scalar_prefetch = 0 : i64, scratch_operands = 0 : i64, tpu.core_type = #tpu.core_type<tc>, window_params = [{transform_indices = @transform_0, window_bounds = array<i64: 32, 128>}, {transform_indices = @transform_1, window_bounds = array<i64: 32, 4>}, {pipeline_mode = #tpu.pipeline_mode<synchronous>, transform_indices = @transform_2, window_bounds = array<i64: 4, 128>}, {transform_indices = @transform_3, window_bounds = array<i64: 32, 128>}]} {
    %c0 = arith.constant 0 : index
    %c0_0 = arith.constant 0 : index
    %0 = vector.load %arg2[%c0, %c0_0] : memref<32x4xf32, #tpu.memory_space<vmem>>, vector<32x4xf32>
    %c0_1 = arith.constant 0 : index
    %c0_2 = arith.constant 0 : index
    %1 = vector.load %arg3[%c0_1, %c0_2] : memref<4x128xf32, #tpu.memory_space<vmem>>, vector<4x128xf32>
    %cst = arith.constant dense<0.000000e+00> : vector<32x128xf32>
    %2 = tpu.matmul %0, %1, %cst {dimension_numbers = #tpu.dot_dimension_numbers<[1], [0], [0], [1], [0, 0, 1, 1], [], []>} : vector<32x4xf32>, vector<4x128xf32>, vector<32x128xf32> -> vector<32x128xf32>
    %c0_3 = arith.constant 0 : index
    %c0_4 = arith.constant 0 : index
    %3 = vector.load %arg1[%c0_3, %c0_4] : memref<32x128xf32, #tpu.memory_space<vmem>>, vector<32x128xf32>
    %4 = arith.addf %3, %2 : vector<32x128xf32>
    %c0_5 = arith.constant 0 : index
    %c0_6 = arith.constant 0 : index
    %5 = vector.load %arg4[%c0_5, %c0_6] : memref<32x128xf32, #tpu.memory_space<vmem>>, vector<32x128xf32>
    tpu.vector_store %arg4[%c0_5, %c0_6], %4 {strides = array<i32>} : memref<32x128xf32, #tpu.memory_space<vmem>>, vector<32x128xf32>,
    return
  }
  func.func @transform_0(%arg0: i32) -> (i32, i32) {
    %c0_i32 = arith.constant 0 : i32
    %c0_i32_0 = arith.constant 0 : i32
    return %arg0, %c0_i32 : i32, i32
  }
  func.func @transform_1(%arg0: i32) -> (i32, i32) {
    %c0_i32 = arith.constant 0 : i32
    %c0_i32_0 = arith.constant 0 : i32
    return %arg0, %c0_i32 : i32, i32
  }
  func.func @transform_2(%arg0: i32) -> (i32, i32) {
    %c0_i32 = arith.constant 0 : i32
    %c0_i32_0 = arith.constant 0 : i32
    %c0_i32_1 = arith.constant 0 : i32
    return %c0_i32, %c0_i32_0 : i32, i32
  }
  func.func @transform_3(%arg0: i32) -> (i32, i32) {
    %c0_i32 = arith.constant 0 : i32
    %c0_i32_0 = arith.constant 0 : i32
    return %arg0, %c0_i32 : i32, i32
  }
}

</mosaic_0001>

<bundles_post_ra>
// kernel: attack_part3_forward.1
= control target key start
LH: loop header
LB: loop body
LE: loop exit
PB: predicated region body
PF: predicated region fallthrough
CT: control target
= control target key end

     0   :  { %s452_s12 = smov 0   ;;  %s475_s0 = inlined_call_operand.vmem [shape: f32[64,128], index: 0, kind: input, shape index: {}, may-alias: {0,3}]   ;;  %s476_s1 = inlined_call_operand.vmem [shape: f32[64,4], index: 1, kind: input, shape index: {}]   ;;  %s477_s2 = inlined_call_operand.vmem [shape: f32[4,128], index: 2, kind: input, shape index: {}]   ;;  %s478_s3 = inlined_call_operand.vmem [shape: f32[64,128], index: 3, kind: output, shape index: {}, may-alias: {0,3}]  }
   0x1 LB: > { %s383_s13 = sadd.s32 4294967295, %s430_s12   ;;  %p387_p0 = scmp.ge.s32.totalorder %s430_s12, 1  ;;  %s430_s12 = sphi %s452_s12, %s13_s12  }
   0x2   : > { %p149_p1 = scmp.lt.s32.totalorder %s430_s12, 3 }
   0x4   : > { %p150_p2 = pnand %p387_p0, %p149_p1 }
   0x5   : > { %s388_s16 = sshll.u32 (!%p150_p2), %s383_s13, 2 }
   0x6   : > { %153 = sbr.rel (%p150_p2) target bundleno = 214 (0xd6), region = 32  ;;  %p179_p3 = scmp.lt.s32.totalorder (!%p150_p2), %s388_s16, 7 }
   0xb   : > { %v200_v0 = vld [vmem:[%s477_s2] sm:$0xf]  ;;  %vm214_vm0 = vcmask 1043456   ;;  %s480_s16 = smov (!%p179_p3, %s388_s16), 7  ;;  %vm201_vm1 = vcmask 31744  }
   0xc   : > { %406 = vmatprep.subr.msk.mxu0 %vm214_vm0, %v200_v0  ;;  %414 = vmatprep.subr.msk.mxu1 %vm214_vm0, %v200_v0  ;;  %s389_s17 = sshll.u32 %s480_s16, 3 }
   0xd   : > { %407 = vmatpush3.msk.msra.mxu0 %vm214_vm0, %v200_v0  ;;  %415 = vmatpush3.msk.msra.mxu1 %vm214_vm0, %v200_v0  ;;  %s188_s20 = scalar_lea.vmem %s476_s1, %s389_s17  ;;  %s182_s23 = scalar_lea.vmem %s475_s0, %s389_s17 }
   0xe   : > { %v196_v1 = vld [vmem:[%s188_s20] sm:$0xff]  ;;  %v198_v2 = vld [vmem:[%s188_s20 + $0x10] sm:$0xff]  ;;  %v197_v3 = vld [vmem:[%s188_s20 + $0x8] sm:$0xff]  ;;  %s194_s26 = scalar_lea.vmem %s478_s3, %s389_s17 }
   0xf   : > { %408 = vmatprep.mubr.msk.f32.mxu0 %vm201_vm1, %v196_v1  ;;  %411 = vmatprep.mubr.msk.f32.mxu1 %vm201_vm1, %v198_v2  ;;  %v199_v4 = vld [vmem:[%s188_s20 + $0x18] sm:$0xff]  ;;  %v303_v7 = vld [vmem:[%s182_s23] sm:$0xff]  ;;  %v304_v8 = vld [vmem:[%s182_s23 + $0x8] sm:$0xff] }
  0x10   : > { %409 = vmatmul.mubr.msk.f32.vlgmr.msra.gmra.mxu0 %vm201_vm1, %v197_v3  ;;  %412 = vmatmul.mubr.msk.f32.vlgmr.msra.gmra.mxu1 %vm201_vm1, %v199_v4  ;;  %v305_v11 = vld [vmem:[%s182_s23 + $0x10] sm:$0xff]  ;;  %v306_v12 = vld [vmem:[%s182_s23 + $0x18] sm:$0xff] }
  0xd0   : > { %v410_v5 = vpop.f32.mrf.mxu0  ;;  %v413_v6 = vpop.f32.mrf.mxu1 }
  0xd1   : > { %v308_v14 = vadd.f32 %v410_v5, %v304_v8  ;;  %v310_v16 = vadd.f32 %v413_v6, %v306_v12 }
  0xd2   : > { %v284_v9 = vpop.f32.mrf.mxu0  ;;  %v294_v10 = vpop.f32.mrf.mxu1 }
  0xd3   : > { %v307_v13 = vadd.f32 %v303_v7, %v284_v9  ;;  %v309_v15 = vadd.f32 %v305_v11, %v294_v10  ;;  %312 = vst [vmem:[%s194_s26 + $0x8] sm:$0xff] %v308_v14  ;;  %314 = vst [vmem:[%s194_s26 + $0x18] sm:$0xff] %v310_v16 }
  0xd5   : > { %311 = vst [vmem:[%s194_s26] sm:$0xff] %v307_v13  ;;  %313 = vst [vmem:[%s194_s26 + $0x10] sm:$0xff] %v309_v15 }
  0xd6 PF: > { %s13_s12 = sadd.s32 1, %s430_s12  }
  0xd7   : > { %p10_p4 = scmp.ge.s32.totalorder %s13_s12, 4  }
  0xd9   :  { %12 = sbr.rel (!%p10_p4) target bundleno = 1 (0x1), region = 65 }

</bundles_post_ra>
